<compile_context>
chip_gen: v6e
topology: v6e:2x2x1
jax: 0.10.0
libtpu: 0.0.40
codegen_flags: <defaults>
</compile_context>

<pallas_src>
import functools

import jax
import jax.numpy as jnp
from jax import lax
from jax.experimental import pallas as pl
from jax.experimental.pallas import tpu as pltpu


def _round_up(x, m):
    return (x + m - 1) // m * m


def _vmem_capacity_bytes():
    try:
        return int(pltpu.get_tpu_info().vmem_capacity_bytes)
    except Exception:
        return 64 * 1024 * 1024  # conservative: v7x per-TensorCore VMEM


def _tile_batch(B, block_b):
    """Pick a batch tile TB and padded batch Bp obeying the (8,128) rules."""
    block_b = max(128, _round_up(block_b, 128))
    b8 = _round_up(B, 8)
    TB = b8 if b8 <= block_b else block_b   # single full tile, or 128-multiple tiles
    Bp = _round_up(B, TB)
    return TB, Bp


def make_fused_tables(user_embed, partner_embed, user_bias, partner_bias,
                      table_dtype=jnp.float32):
    """Build fused, lane-padded tables ONCE (parameter-init time, not per call)."""
    U, D = user_embed.shape
    Dp = max(128, _round_up(D + 2, 128))
    ones = jnp.ones((U, 1), jnp.float32)
    pad = jnp.zeros((U, Dp - (D + 2)), jnp.float32)
    ue = jnp.concatenate(
        [user_embed.astype(jnp.float32),
         user_bias.astype(jnp.float32).reshape(U, 1), ones, pad],
        axis=1).astype(table_dtype)
    pe = jnp.concatenate(
        [partner_embed.astype(jnp.float32), ones,
         partner_bias.astype(jnp.float32).reshape(U, 1), pad],
        axis=1).astype(table_dtype)
    return ue, pe


# --------------------------------------------------------------------------
# Fast path: VMEM-resident tables, one-hot gather on the MXU.
# --------------------------------------------------------------------------
def _mf_resident_kernel(uid_ref, pid_ref, ue_ref, pe_ref, out_ref):
    # uid_ref/pid_ref: (TB, 1) int32; ue_ref/pe_ref: (U, Dp) resident in VMEM;
    # out_ref: (1, TB) f32 lane-dense.
    tb = uid_ref.shape[0]
    U, dp = ue_ref.shape
    lane_ids = lax.broadcasted_iota(jnp.int32, (tb, U), 1)
    onehot_u = (uid_ref[...] == lane_ids).astype(jnp.float32).astype(ue_ref.dtype)
    onehot_p = (pid_ref[...] == lane_ids).astype(jnp.float32).astype(pe_ref.dtype)
    uvec = jnp.dot(onehot_u, ue_ref[...], preferred_element_type=jnp.float32)
    pvec = jnp.dot(onehot_p, pe_ref[...], preferred_element_type=jnp.float32)
    prod = uvec * pvec                                              # (TB, Dp) f32
    ones_row = jnp.ones((1, dp), jnp.float32)
    logits = lax.dot_general(ones_row, prod,
                             dimension_numbers=(((1,), (1,)), ((), ())),
                             preferred_element_type=jnp.float32)    # (1, TB)
    out_ref[...] = jax.nn.sigmoid(logits)


def _mf_forward_resident(user_ids, partner_ids, ue_f, pe_f, *, block_b):
    B = int(user_ids.shape[0])
    U, Dp = ue_f.shape
    TB, Bp = _tile_batch(B, min(block_b, 256))   # cap TB: bounds one-hot size
    uid2 = jnp.zeros((Bp, 1), jnp.int32).at[:B, 0].set(user_ids.astype(jnp.int32))
    pid2 = jnp.zeros((Bp, 1), jnp.int32).at[:B, 0].set(partner_ids.astype(jnp.int32))

    itemsize = ue_f.dtype.itemsize
    est = (4 * U * Dp * itemsize        # 2 tables x 2 pipeline buffers
           + 4 * TB * U * 4             # 2 one-hots
           + 6 * TB * Dp * 4)           # gathered vecs + product
    vmem_limit = None
    if est > 16 * 1024 * 1024:
        cap = _vmem_capacity_bytes()
        vmem_limit = int(min(2 * est, max(cap - 8 * 1024 * 1024, 32 * 1024 * 1024)))

    out = pl.pallas_call(
        _mf_resident_kernel,
        out_shape=jax.ShapeDtypeStruct((1, Bp), jnp.float32),
        grid_spec=pltpu.PrefetchScalarGridSpec(
            num_scalar_prefetch=0,
            grid=(Bp // TB,),
            in_specs=[
                pl.BlockSpec((TB, 1), lambda i: (i, 0)),
                pl.BlockSpec((TB, 1), lambda i: (i, 0)),
                pl.BlockSpec((U, Dp), lambda i: (0, 0)),   # resident, fetched once
                pl.BlockSpec((U, Dp), lambda i: (0, 0)),
            ],
            out_specs=pl.BlockSpec((1, TB), lambda i: (0, i)),
        ),
        compiler_params=pltpu.CompilerParams(
            dimension_semantics=("parallel",),
            vmem_limit_bytes=vmem_limit,
        ),
    )(uid2, pid2, ue_f, pe_f)
    return out[0, :B]


# --------------------------------------------------------------------------
# Gather path: tables in HBM, double-buffered per-row DMA gather.
# --------------------------------------------------------------------------
def _mf_gather_kernel(uid_ref, pid_ref, ue_hbm, pe_hbm, out_ref,
                      ubuf, pbuf, sems, *, unroll):
    # uid_ref/pid_ref: (Bp,) int32 in SMEM (scalar prefetch)
    # ue_hbm/pe_hbm:   (U, Dp) fused tables left in HBM (pl.ANY)
    # ubuf/pbuf:       (2*TB, Dp) VMEM double buffers (slot = row offset)
    # sems:            DMA semaphores (2, 2) -> [table, slot]
    # out_ref:         (1, TB) f32 lane-dense
    tb = ubuf.shape[0] // 2
    dp = ubuf.shape[1]
    i = pl.program_id(0)
    n = pl.num_programs(0)
    slot = i & 1

    def issue(tile, s):
        base = tile * tb
        row0 = s * tb
        usem = sems.at[0, s]
        psem = sems.at[1, s]

        @pl.loop(0, tb // unroll)
        def _(g):
            r0 = g * unroll
            for j in range(unroll):          # hand-unrolled descriptor issue
                r = r0 + j
                u = uid_ref[base + r]
                p = pid_ref[base + r]
                pltpu.make_async_copy(ue_hbm.at[pl.ds(u, 1)],
                                      ubuf.at[pl.ds(row0 + r, 1)], usem).start()
                pltpu.make_async_copy(pe_hbm.at[pl.ds(p, 1)],
                                      pbuf.at[pl.ds(row0 + r, 1)], psem).start()

    @pl.when(i == 0)
    def _():
        issue(i, slot)                  # prime: this tile's rows -> slot 0

    @pl.when(i + 1 < n)
    def _():
        issue(i + 1, 1 - slot)          # prefetch next tile into the other slot

    # Coalesced drain: ONE wait per table whose byte count equals the sum of
    # the TB single-row copies issued into this slot.
    off = pl.multiple_of(slot * tb, 8)
    pltpu.make_async_copy(ue_hbm.at[pl.ds(0, tb)],
                          ubuf.at[pl.ds(off, tb)], sems.at[0, slot]).wait()
    pltpu.make_async_copy(pe_hbm.at[pl.ds(0, tb)],
                          pbuf.at[pl.ds(off, tb)], sems.at[1, slot]).wait()

    prod = (ubuf[pl.ds(off, tb), :].astype(jnp.float32)
            * pbuf[pl.ds(off, tb), :].astype(jnp.float32))          # (TB, Dp)
    ones_row = jnp.ones((1, dp), jnp.float32)
    logits = lax.dot_general(ones_row, prod,
                             dimension_numbers=(((1,), (1,)), ((), ())),
                             preferred_element_type=jnp.float32)    # (1, TB)
    out_ref[...] = jax.nn.sigmoid(logits)


def _mf_forward_gather(user_ids, partner_ids, ue_f, pe_f, *, block_b):
    B = int(user_ids.shape[0])
    U, Dp = ue_f.shape
    TB, Bp = _tile_batch(B, block_b)
    uid = jnp.zeros((Bp,), jnp.int32).at[:B].set(user_ids.astype(jnp.int32))
    pid = jnp.zeros((Bp,), jnp.int32).at[:B].set(partner_ids.astype(jnp.int32))
    unroll = 8 if TB % 8 == 0 else 1
    kernel = functools.partial(_mf_gather_kernel, unroll=unroll)

    out = pl.pallas_call(
        kernel,
        out_shape=jax.ShapeDtypeStruct((1, Bp), jnp.float32),
        grid_spec=pltpu.PrefetchScalarGridSpec(
            num_scalar_prefetch=2,
            grid=(Bp // TB,),
            in_specs=[
                pl.BlockSpec(memory_space=pl.ANY),   # fused user table (HBM)
                pl.BlockSpec(memory_space=pl.ANY),   # fused partner table (HBM)
            ],
            out_specs=pl.BlockSpec((1, TB), lambda i, uid_ref, pid_ref: (0, i)),
            scratch_shapes=[
                pltpu.VMEM((2 * TB, Dp), ue_f.dtype),
                pltpu.VMEM((2 * TB, Dp), pe_f.dtype),
                pltpu.SemaphoreType.DMA((2, 2)),
            ],
        ),
        # "arbitrary": the manual cross-tile double buffer requires in-order
        # sequential execution of the batch axis.
        compiler_params=pltpu.CompilerParams(
            dimension_semantics=("arbitrary",),
        ),
    )(uid, pid, ue_f, pe_f)
    return out[0, :B]


def mf_forward(user_ids, partner_ids, ue_f, pe_f, *, block_b=512,
               force_gather=False):
    """MFModel.forward. `ue_f`/`pe_f` are the fused tables from make_fused_tables."""
    U, Dp = ue_f.shape
    table_bytes = 2 * U * Dp * ue_f.dtype.itemsize
    cap = _vmem_capacity_bytes()
    small = (not force_gather) and (U <= 2048) and (table_bytes <= cap // 8)
    if small:
        return _mf_forward_resident(user_ids, partner_ids, ue_f, pe_f,
                                    block_b=block_b)
    return _mf_forward_gather(user_ids, partner_ids, ue_f, pe_f,
                              block_b=block_b)


def mf_forward_ref(user_ids, partner_ids, user_embed, partner_embed,
                   user_bias, partner_bias):
    """Pure-JAX reference mirroring the PyTorch forward."""
    user_vecs = user_embed[user_ids]
    partner_vecs = partner_embed[partner_ids]
    dot = jnp.sum(user_vecs * partner_vecs, axis=1)
    ub = user_bias[user_ids][:, 0]
    pb = partner_bias[partner_ids][:, 0]
    return jax.nn.sigmoid(dot + ub + pb)


if __name__ == "__main__":
    num_users = 64
    embedding_dim = 32

    key = jax.random.PRNGKey(0)
    k_ue, k_pe, k_ub, k_pb, k_uid, k_pid = jax.random.split(key, 6)

    user_embed = 0.1 * jax.random.normal(k_ue, (num_users, embedding_dim), jnp.float32)
    partner_embed = 0.1 * jax.random.normal(k_pe, (num_users, embedding_dim), jnp.float32)
    # Biases drawn non-zero so the fused-bias path is exercised numerically
    # (PyTorch inits them to zero; forward semantics don't depend on init).
    user_bias = 0.1 * jax.random.normal(k_ub, (num_users, 1), jnp.float32)
    partner_bias = 0.1 * jax.random.normal(k_pb, (num_users, 1), jnp.float32)

    # Fused tables built ONCE (hoisted out of the forward call).
    tables_f32 = make_fused_tables(user_embed, partner_embed, user_bias,
                                   partner_bias, table_dtype=jnp.float32)
    tables_bf16 = make_fused_tables(user_embed, partner_embed, user_bias,
                                    partner_bias, table_dtype=jnp.bfloat16)

    def run_case(batch, *, tables, force_gather, block_b, atol):
        ku = jax.random.fold_in(k_uid, batch)
        kp = jax.random.fold_in(k_pid, batch)
        user_ids = jax.random.randint(ku, (batch,), 0, num_users, dtype=jnp.int32)
        partner_ids = jax.random.randint(kp, (batch,), 0, num_users, dtype=jnp.int32)
        out = mf_forward(user_ids, partner_ids, *tables,
                         block_b=block_b, force_gather=force_gather)
        out = jax.block_until_ready(out)
        ref = mf_forward_ref(user_ids, partner_ids, user_embed, partner_embed,
                             user_bias, partner_bias)
        assert out.shape == (batch,), out.shape
        assert jnp.allclose(out, ref, atol=atol, rtol=1e-4), (out, ref)

    # VMEM-resident fast path (tiny tables): single-tile and multi-tile grids.
    run_case(8,   tables=tables_f32,  force_gather=False, block_b=512, atol=1e-4)
    run_case(300, tables=tables_f32,  force_gather=False, block_b=512, atol=1e-4)
    # HBM row-gather path (forced): grid=1 and grid>1 (cross-tile double buffer).
    run_case(200, tables=tables_f32,  force_gather=True,  block_b=512, atol=1e-4)
    run_case(300, tables=tables_f32,  force_gather=True,  block_b=128, atol=1e-4)
    # HBM gather path with bf16 tables (halves gathered bytes per row).
    run_case(300, tables=tables_bf16, force_gather=True,  block_b=128, atol=5e-3)

    print("KERNEL_OK")
</pallas_src>

<mosaic_0001>
module attributes {stable_mosaic.version = 11 : i64} {
  func.func @_mf_resident_kernel(%arg0: i32, %arg1: memref<8x1xi32, #tpu.memory_space<vmem>>, %arg2: memref<8x1xi32, #tpu.memory_space<vmem>>, %arg3: memref<64x128xf32, #tpu.memory_space<vmem>>, %arg4: memref<64x128xf32, #tpu.memory_space<vmem>>, %arg5: memref<1x8xf32, #tpu.memory_space<vmem>>) attributes {dimension_semantics = [#tpu.dimension_semantics<parallel>], iteration_bounds = array<i64: 1>, scalar_prefetch = 0 : i64, scratch_operands = 0 : i64, tpu.core_type = #tpu.core_type<tc>, window_params = [{transform_indices = @transform_0, window_bounds = array<i64: 8, 1>}, {transform_indices = @transform_1, window_bounds = array<i64: 8, 1>}, {pipeline_mode = #tpu.pipeline_mode<synchronous>, transform_indices = @transform_2, window_bounds = array<i64: 64, 128>}, {pipeline_mode = #tpu.pipeline_mode<synchronous>, transform_indices = @transform_3, window_bounds = array<i64: 64, 128>}, {transform_indices = @transform_4, window_bounds = array<i64: 1, 8>}]} {
    %0 = tpu.iota {dimensions = array<i32: 1>} : vector<8x64xi32>
    %c0 = arith.constant 0 : index
    %c0_0 = arith.constant 0 : index
    %1 = vector.load %arg1[%c0, %c0_0] : memref<8x1xi32, #tpu.memory_space<vmem>>, vector<8x1xi32>
    %2 = vector.broadcast %1 : vector<8x1xi32> to vector<8x64xi32>
    %3 = arith.cmpi eq, %2, %0 : vector<8x64xi32>
    %4 = arith.extui %3 : vector<8x64xi1> to vector<8x64xi32>
    %5 = arith.sitofp %4 : vector<8x64xi32> to vector<8x64xf32>
    %c0_1 = arith.constant 0 : index
    %c0_2 = arith.constant 0 : index
    %6 = vector.load %arg2[%c0_1, %c0_2] : memref<8x1xi32, #tpu.memory_space<vmem>>, vector<8x1xi32>
    %7 = vector.broadcast %6 : vector<8x1xi32> to vector<8x64xi32>
    %8 = arith.cmpi eq, %7, %0 : vector<8x64xi32>
    %9 = arith.extui %8 : vector<8x64xi1> to vector<8x64xi32>
    %10 = arith.sitofp %9 : vector<8x64xi32> to vector<8x64xf32>
    %c0_3 = arith.constant 0 : index
    %c0_4 = arith.constant 0 : index
    %11 = vector.load %arg3[%c0_3, %c0_4] : memref<64x128xf32, #tpu.memory_space<vmem>>, vector<64x128xf32>
    %cst = arith.constant dense<0.000000e+00> : vector<8x128xf32>
    %12 = tpu.matmul %5, %11, %cst {dimension_numbers = #tpu.dot_dimension_numbers<[1], [0], [0], [1], [0, 0, 1, 1], [], []>} : vector<8x64xf32>, vector<64x128xf32>, vector<8x128xf32> -> vector<8x128xf32>
    %c0_5 = arith.constant 0 : index
    %c0_6 = arith.constant 0 : index
    %13 = vector.load %arg4[%c0_5, %c0_6] : memref<64x128xf32, #tpu.memory_space<vmem>>, vector<64x128xf32>
    %cst_7 = arith.constant dense<0.000000e+00> : vector<8x128xf32>
    %14 = tpu.matmul %10, %13, %cst_7 {dimension_numbers = #tpu.dot_dimension_numbers<[1], [0], [0], [1], [0, 0, 1, 1], [], []>} : vector<8x64xf32>, vector<64x128xf32>, vector<8x128xf32> -> vector<8x128xf32>
    %15 = arith.mulf %12, %14 : vector<8x128xf32>
    %cst_8 = arith.constant 1.000000e+00 : f32
    %16 = vector.broadcast %cst_8 : f32 to vector<1x128xf32>
    %cst_9 = arith.constant dense<0.000000e+00> : vector<1x8xf32>
    %17 = tpu.matmul %16, %15, %cst_9 {dimension_numbers = #tpu.dot_dimension_numbers<[1], [1], [0], [0], [0, 0, 1, 0], [], []>} : vector<1x128xf32>, vector<8x128xf32>, vector<1x8xf32> -> vector<1x8xf32>
    %18 = arith.negf %17 : vector<1x8xf32>
    %19 = math.exp %18 : vector<1x8xf32>
    %cst_10 = arith.constant 1.000000e+00 : f32
    %20 = vector.broadcast %cst_10 : f32 to vector<1x8xf32>
    %21 = arith.addf %20, %19 : vector<1x8xf32>
    %22 = arith.divf %20, %21 : vector<1x8xf32>
    %c0_11 = arith.constant 0 : index
    %c0_12 = arith.constant 0 : index
    %23 = vector.load %arg5[%c0_11, %c0_12] : memref<1x8xf32, #tpu.memory_space<vmem>>, vector<1x8xf32>
    tpu.vector_store %arg5[%c0_11, %c0_12], %22 {strides = array<i32>} : memref<1x8xf32, #tpu.memory_space<vmem>>, vector<1x8xf32>,
    return
  }
  func.func @transform_0(%arg0: i32) -> (i32, i32) {
    %c0_i32 = arith.constant 0 : i32
    %c0_i32_0 = arith.constant 0 : i32
    return %arg0, %c0_i32 : i32, i32
  }
  func.func @transform_1(%arg0: i32) -> (i32, i32) {
    %c0_i32 = arith.constant 0 : i32
    %c0_i32_0 = arith.constant 0 : i32
    return %arg0, %c0_i32 : i32, i32
  }
  func.func @transform_2(%arg0: i32) -> (i32, i32) {
    %c0_i32 = arith.constant 0 : i32
    %c0_i32_0 = arith.constant 0 : i32
    %c0_i32_1 = arith.constant 0 : i32
    return %c0_i32, %c0_i32_0 : i32, i32
  }
  func.func @transform_3(%arg0: i32) -> (i32, i32) {
    %c0_i32 = arith.constant 0 : i32
    %c0_i32_0 = arith.constant 0 : i32
    %c0_i32_1 = arith.constant 0 : i32
    return %c0_i32, %c0_i32_0 : i32, i32
  }
  func.func @transform_4(%arg0: i32) -> (i32, i32) {
    %c0_i32 = arith.constant 0 : i32
    %c0_i32_0 = arith.constant 0 : i32
    return %c0_i32, %arg0 : i32, i32
  }
}

</mosaic_0001>

<bundles_post_ra>
// kernel: tpu_custom_call.1
= control target key start
LH: loop header
LB: loop body
LE: loop exit
PB: predicated region body
PF: predicated region fallthrough
CT: control target
= control target key end

     0   :  { %9 = vsyncpa [#allocation3], 0  ;;  %s542_s0 = inlined_call_operand.vmem [shape: s32[8,1], index: 0, kind: input, shape index: {}]   ;;  %s543_s1 = inlined_call_operand.vmem [shape: s32[8,1], index: 1, kind: input, shape index: {}]   ;;  %s544_s2 = inlined_call_operand.hbm [shape: f32[64,128], index: 2, kind: input, shape index: {}]   ;;  %s545_s3 = inlined_call_operand.hbm [shape: f32[64,128], index: 3, kind: input, shape index: {}]   ;;  %s546_s4 = inlined_call_operand.hbm [shape: f32[1,8], index: 4, kind: output, shape index: {}]  }
   0x1   :  { %10 = vsyncpa [#allocation6], 0 }
   0x2   :  { %11 = vsyncpa [#allocation4], 0  ;;  %s468_s15 = smov [#allocation2]  }
   0x3   :  { %s21_s16 = sshll.u32 %s468_s15, 4  ;;  %s22_s16 = int_to_ptr.vmem [resolvable:$true] %s21_s16 }
   0x4   :  { %s410_s17 = scalar_lea.vmem %s22_s16, 1024  ;;  %p415_p1 = scmp.lt.s32.totalorder %s22_s16, %s22_s16 }
   0x5   :  { %p411_p0 = scmp.ne.s32.totalorder %s22_s16, %s410_s17  ;;  %p416_p2 = scmp.lt.s32.totalorder %s410_s17, %s410_s17 }
   0x7   :  { %p417_p3 = por %p416_p2, %p415_p1 }
   0x9   :  { %p418_p4 = pnand %p417_p3, %p411_p0 }
   0xb   :  { %421 = shalt.err (!%p418_p4)
}
   0xc   :  { %s469_s18 = smov 128   ;;  %s470_s19 = smov 8  }
   0xd   :  { %27 = dma.hbm_to_vmem [thread:$0]  %s544_s2, 1024, %s22_s16, [#allocation3], %s469_s18, %s469_s18, %s470_s19  }
   0xe   :  { %s471_s22 = smov [#allocation5]  }
   0xf   :  { %s33_s23 = sshll.u32 %s471_s22, 4  ;;  %s34_s23 = int_to_ptr.vmem [resolvable:$true] %s33_s23 }
  0x10   :  { %s430_s24 = scalar_lea.vmem %s34_s23, 1024  ;;  %p435_p6 = scmp.lt.s32.totalorder %s34_s23, %s34_s23 }
  0x11   :  { %p431_p5 = scmp.ne.s32.totalorder %s34_s23, %s430_s24  ;;  %p436_p7 = scmp.lt.s32.totalorder %s430_s24, %s430_s24 }
  0x13   :  { %p437_p8 = por %p436_p7, %p435_p6 }
  0x15   :  { %p438_p9 = pnand %p437_p8, %p431_p5 }
  0x17   :  { %441 = shalt.err (!%p438_p9)
}
  0x18   :  { %39 = dma.hbm_to_vmem [thread:$0]  %s545_s3, 1024, %s34_s23, [#allocation6], %s469_s18, %s469_s18, %s470_s19  }
  0x19   :  { %462 = dma.done.wait [#allocation3], 1024  }
  0x1a   :  { %463 = vsyncadd [#allocation3], 4294966272 }
  0x1b   :  { %464 = dma.done.wait [#allocation6], 1024  }
  0x1c   :  { %465 = vsyncadd [#allocation6], 4294966272  ;;  %v472_v0 = vmov 0   ;;  %v473_v1 = vmov 0.0   ;;  %vm474_vm0 = vmmov 0   ;;  %v48_v2 = vld [vmem:[%s542_s0] sm:$0xff]  ;;  %v46_v20 = vlaneseq }
  0x1d   :  { %397 = vset.pattern.permute.xlu0 %v472_v0  ;;  %345 = vmatprep.subr.mxu0 %v473_v1  ;;  %v69_v3 = vld [vmem:[#allocation2 + $0x38] sm:$0xff]  ;;  %v68_v4 = vld [vmem:[#allocation2 + $0x30] sm:$0xff]  ;;  %v55_v6 = vld [vmem:[%s543_s1] sm:$0xff]  ;;  %vm70_vm1 = vcmask 523264   ;;  %v475_v31 = vmov 1.0   ;;  %s476_s0 = smov [#allocation7]  }
  0x1e   :  { %364 = vmatprep.subr.mxu1 %v473_v1  ;;  %361 = vmatprep.mubr.msk.f32.mxu0 %vm474_vm0, %v473_v1  ;;  %v151_v5 = vld [vmem:[#allocation5 + $0x38] sm:$0xff]  ;;  %v67_v7 = vld [vmem:[#allocation2 + $0x28] sm:$0xff]  ;;  %v150_v8 = vld [vmem:[#allocation5 + $0x30] sm:$0xff]  ;;  %v47_v21 = vand.u32 127, %v46_v20  ;;  %s310_s1 = sshll.u32 %s476_s0, 4  ;;  %vm302_vm4 = vcmask 57344   ;;  %s311_s1 = int_to_ptr.vmem [resolvable:$true] %s310_s1 }
  0x1f   :  { %380 = vmatprep.mubr.msk.f32.mxu1 %vm474_vm0, %v473_v1  ;;  %50 = vperm.xlu0 %397, %v48_v2   ;;  %v66_v9 = vld [vmem:[#allocation2 + $0x20] sm:$0xff]  ;;  %v149_v10 = vld [vmem:[#allocation5 + $0x28] sm:$0xff]  ;;  %v65_v11 = vld [vmem:[#allocation2 + $0x18] sm:$0xff]  ;;  %s442_s29 = scalar_lea.vmem %s311_s1, 16  ;;  %s446_s30 = scalar_lea.vmem %s311_s1, 32 }
  0x20   :  { %346 = vmatpush3.msra.mxu0 %v69_v3  ;;  %365 = vmatpush3.msra.mxu1 %v151_v5  ;;  %v148_v12 = vld [vmem:[#allocation5 + $0x20] sm:$0xff]  ;;  %v64_v13 = vld [vmem:[#allocation2 + $0x10] sm:$0xff]  ;;  %v147_v14 = vld [vmem:[#allocation5 + $0x18] sm:$0xff]  ;;  %p443_p10 = scmp.ne.s32.totalorder %s311_s1, %s442_s29  ;;  %p447_p11 = scmp.lt.s32.totalorder %s311_s1, %s311_s1 }
  0x21   :  { %347 = vmatprep.subr.mxu0 %v473_v1  ;;  %366 = vmatprep.subr.mxu1 %v473_v1  ;;  %v63_v15 = vld [vmem:[#allocation2 + $0x8] sm:$0xff]  ;;  %v146_v16 = vld [vmem:[#allocation5 + $0x10] sm:$0xff]  ;;  %v62_v17 = vld [vmem:[#allocation2] sm:$0xff]  ;;  %p448_p12 = scmp.lt.s32.totalorder %s446_s30, %s442_s29 }
  0x22   :  { %348 = vmatpush3.msra.mxu0 %v68_v4  ;;  %367 = vmatpush3.msra.mxu1 %v150_v8  ;;  %v145_v18 = vld [vmem:[#allocation5 + $0x8] sm:$0xff]  ;;  %v144_v19 = vld [vmem:[#allocation5] sm:$0xff] }
  0x23   :  { %349 = vmatprep.subr.mxu0 %v473_v1  ;;  %57 = vperm.xlu0 %397, %v55_v6   ;;  %p449_p13 = por %p448_p12, %p447_p11 }
  0x24   :  { %350 = vmatpush3.msra.mxu0 %v67_v7  ;;  %368 = vmatprep.subr.mxu1 %v473_v1 }
  0x25   :  { %351 = vmatprep.subr.mxu0 %v473_v1  ;;  %369 = vmatpush3.msra.mxu1 %v149_v10  ;;  %p450_p0 = pnand %p449_p13, %p443_p10 }
  0x26   :  { %352 = vmatpush3.msra.mxu0 %v66_v9  ;;  %370 = vmatprep.subr.mxu1 %v473_v1 }
  0x27   :  { %353 = vmatprep.subr.mxu0 %v473_v1  ;;  %371 = vmatpush3.msra.mxu1 %v148_v12 }
  0x28   :  { %354 = vmatpush3.msra.mxu0 %v65_v11  ;;  %372 = vmatprep.subr.mxu1 %v473_v1 }
  0x29   :  { %355 = vmatprep.subr.mxu0 %v473_v1  ;;  %373 = vmatpush3.msra.mxu1 %v147_v14 }
  0x2a   :  { %356 = vmatpush3.msra.mxu0 %v64_v13  ;;  %374 = vmatprep.subr.mxu1 %v473_v1 }
  0x2b   :  { %357 = vmatprep.subr.mxu0 %v473_v1  ;;  %375 = vmatpush3.msra.mxu1 %v146_v16 }
  0x2c   :  { %358 = vmatpush3.msra.mxu0 %v63_v15  ;;  %376 = vmatprep.subr.mxu1 %v473_v1 }
  0x2d   :  { %359 = vmatprep.subr.mxu0 %v473_v1  ;;  %377 = vmatpush3.msra.mxu1 %v145_v18 }
  0x2e   :  { %360 = vmatpush3.msra.mxu0 %v62_v17  ;;  %378 = vmatprep.subr.mxu1 %v473_v1 }
  0x2f   :  { %383 = vmatprep.subr.mxu0 %v473_v1  ;;  %379 = vmatpush3.msra.mxu1 %v144_v19 }
  0x9a   :  { %v51_v22 = vpop.permute.xlu0 %50 }
  0x9b   :  { %vm52_vm2 = vcmp.eq.s32.totalorder %v51_v22, %v47_v21 }
  0x9c   :  { %v320_v23 = vsel %vm52_vm2, 1.0, %v473_v1 }
  0x9d   :  { %362 = vmatmul.mubr.msk.f32.vlgmr.msra.gmra.mxu0 %vm70_vm1, %v320_v23 }
  0x9e   :  { %v58_v24 = vpop.permute.xlu0 %57  ;;  %385 = vmatprep.mubr.msk.f32.mxu0 %vm474_vm0, %v473_v1 }
  0x9f   :  { %vm59_vm3 = vcmp.eq.s32.totalorder %v58_v24, %v47_v21 }
  0xa0   :  { %v321_v25 = vsel %vm59_vm3, 1.0, %v473_v1 }
  0xa1   :  { %381 = vmatmul.mubr.msk.f32.vlgmr.msra.gmra.mxu1 %vm70_vm1, %v321_v25 }
 0x15d   :  { %v140_v26 = vpop.f32.mrf.mxu0 }
 0x15f   :  { %v363_v27 = vpop.f32.mrf.mxu0 }
 0x161   :  { %v221_v28 = vpop.f32.mrf.mxu1 }
 0x162   :  { %v225_v29 = vmul.f32 %v221_v28, %v140_v26 }
 0x163   :  { %v382_v30 = vpop.f32.mrf.mxu1 }
 0x164   :  { %384 = vmatpush3.xpose.msra.mxu0 %v225_v29 }
 0x167   :  { %386 = vmatmul.mubr.f32.vlgmr.msra.gmra.mxu0 %v475_v31 }
 0x227   :  { %v292_v32 = vpop.f32.mrf.mxu0 }
 0x228   :  { %v324_v33 = vmul.f32 -1.442695, %v292_v32 }
 0x229   :  { %v387_v34 = vpop.f32.mrf.mxu0 }
 0x22a   :  { %398 = vpow2.f32 %v324_v33 }
 0x237   :  { %v399_v35 = vpop.eup %398 }
 0x238   :  { %v299_v36 = vadd.f32 1.0, %v399_v35 }
 0x23a   :  { %400 = vrcp.f32 %v299_v36 }
 0x247   :  { %v401_v37 = vpop.eup %400 }
 0x248   :  { %303 = vst.msk [vmem:[#allocation7] sm:$0x1] %vm302_vm4, %v401_v37 }
 0x249   :  { %453 = shalt.err (!%p450_p0)
}
 0x24a   :  { %313 = dma.vmem_to_hbm [thread:$0]  %s311_s1, 16, %s546_s4, [#allocation4]  }
 0x24b   :  { %466 = dma.done.wait [#allocation4], 16  }
 0x24c   :  { %467 = vsyncadd [#allocation4], 4294967280 }
 0x24d   :  { %317 = vsyncpa [#allocation3], 1 }
 0x24e   :  { %318 = vsyncpa [#allocation6], 1 }
 0x24f   :  { %319 = vsyncpa [#allocation4], 1 }

</bundles_post_ra>
